<compile_context>
chip_gen: v7x
topology: tpu7x:2x2x1
jax: 0.10.0
libtpu: 0.0.40
codegen_flags: <defaults>
</compile_context>

<pallas_src>
import functools

import jax
import jax.numpy as jnp
from jax.experimental import pallas as pl
from jax.experimental.pallas import tpu as pltpu


def _perm_loss_kernel(mm_ref, mask_ref, label_ref, out_ref, acc_ref, *,
                      c_total, c_tile, n_inner, n_blocks, needs_row_mask,
                      binary_labels):
    i = pl.program_id(0)          # outer ("parallel") axis over c-tile halves
    j = pl.program_id(1)          # inner (reduction) axis over c-tiles
    blk = i * n_inner + j         # un-clamped c-block index

    @pl.when(j == 0)
    def _init():
        acc_ref[...] = jnp.zeros_like(acc_ref)

    mm = mm_ref[...]                          # (c_tile, n) f32
    keep = mask_ref[...] != 0                 # (c_tile, n) bool, from int8
    p = jnp.where(keep, mm, 0.0)              # == matching_matrix * mask.float()
    y = label_ref[...]                        # (1, n), broadcasts over rows

    # PyTorch BCE with its -100 clamp on the log terms.
    if binary_labels:
        # y in {0, 1}: pick the relevant probability and take a single log.
        pq = jnp.where(y > 0.5, p, 1.0 - p)
        term = jnp.maximum(jnp.log(pq), -100.0)
    else:
        log_p = jnp.maximum(jnp.log(p), -100.0)
        log_1mp = jnp.maximum(jnp.log1p(-p), -100.0)
        # Factored form: one fewer mul/sub than y*log_p + (1-y)*log_1mp.
        term = log_1mp + y * (log_p - log_1mp)

    def _accumulate(t):
        # Cross-sublane fold (XLU) into the small (1, n) accumulator.
        acc_ref[...] = acc_ref[...] + jnp.sum(t, axis=0, keepdims=True)

    if needs_row_mask:
        is_tail = blk == (n_blocks - 1)

        @pl.when(jnp.logical_and(blk < n_blocks, jnp.logical_not(is_tail)))
        def _acc_full():
            _accumulate(term)

        @pl.when(is_tail)
        def _acc_tail():
            # Last c-tile extends past c: select away padded rows *before*
            # accumulating (drops NaN/Inf from logs on uninitialized VMEM rows).
            rows = blk * c_tile + jax.lax.broadcasted_iota(jnp.int32, term.shape, 0)
            _accumulate(jnp.where(rows < c_total, term, 0.0))
    else:
        @pl.when(blk < n_blocks)   # gate off the duplicated step when n_blocks is odd
        def _acc():
            _accumulate(term)

    @pl.when(j == pl.num_programs(1) - 1)
    def _finalize():
        partial = -jnp.sum(acc_ref[...])          # one small XLU reduce per outer block
        out_ref[...] = jnp.broadcast_to(partial, out_ref.shape)


def permutation_loss(matching_matrix, label, mask, *,
                     binary_labels=False,
                     target_tile_bytes=6 * 1024 * 1024):
    """matching_matrix: (c,q,t) f32 in [0,1]; label: (q,t) f32; mask: (c,q,t) bool.

    binary_labels: set True when `label` is known (statically) to be 0/1 — enables
    the single-log fast path (helps compute-bound v7x; no effect on correctness).
    """
    c, q, t = matching_matrix.shape
    n = q * t
    total = c * q * t

    # Lane-dense layout plumbing (free reshapes of contiguous arrays).
    mm2 = matching_matrix.reshape(c, n).astype(jnp.float32)
    mask2 = mask.reshape(c, n).astype(jnp.int8)     # 1 B/elem instead of 4 B f32
    label2 = label.reshape(1, n).astype(jnp.float32)

    # --- choose the c tiling -------------------------------------------------
    # Tile budget counts both streams: 4 B (f32 mm) + 1 B (int8 mask) per element.
    rows_target = max(1, target_tile_bytes // (5 * n))
    if c <= max(rows_target, 32):
        c_tile = c                                  # single block == full dims
        n_blocks = 1
    else:
        # Multiple of 32 keeps both the f32 (8,128) and int8 (32,128) tiling rules.
        c_tile = max(32, (rows_target // 32) * 32)
        n_blocks = pl.cdiv(c, c_tile)
    # TODO(synk): also tile the lane (q*t) axis when a single (32, q*t) f32+int8
    # row-tile alone would exceed the scoped-VMEM budget (extremely wide q*t).

    # Megacore: always split the c-tiles across two outer "parallel" programs
    # when there is more than one tile; odd counts get one gated duplicate step.
    n_outer = 2 if n_blocks >= 2 else 1
    n_inner = pl.cdiv(n_blocks, n_outer)

    needs_row_mask = (c % c_tile) != 0

    kernel = functools.partial(
        _perm_loss_kernel,
        c_total=c, c_tile=c_tile, n_inner=n_inner, n_blocks=n_blocks,
        needs_row_mask=needs_row_mask, binary_labels=binary_labels)

    def c_block(i, j):
        # Clamp so the duplicated step (odd n_blocks) never DMAs out of bounds;
        # its accumulation is gated off inside the kernel.
        return (jnp.minimum(i * n_inner + j, n_blocks - 1), 0)

    # Explicit scoped-VMEM limit sized to the double-buffered footprint
    # (2x mm f32 + 2x mask int8 + label + small acc/out) with headroom, so
    # larger tiles also fit v5e's 16 MiB default and stay well under v7x's
    # 64 MiB physical VMEM.
    tile_bytes = c_tile * n * 5
    footprint = 2 * tile_bytes + 3 * n * 4 + 2 * 8 * 128 * 4
    vmem_limit = min(max(footprint + (4 << 20), 16 << 20), 56 << 20)

    partials = pl.pallas_call(
        kernel,
        # (8,128)-shaped per-outer-block output keeps stores unmasked/lane-dense.
        out_shape=jax.ShapeDtypeStruct((n_outer, 8, 128), jnp.float32),
        grid_spec=pltpu.PrefetchScalarGridSpec(
            num_scalar_prefetch=0,
            grid=(n_outer, n_inner),
            in_specs=[
                pl.BlockSpec((c_tile, n), c_block),            # mm (f32)
                pl.BlockSpec((c_tile, n), c_block),            # mask (int8)
                pl.BlockSpec((1, n), lambda i, j: (0, 0)),     # label (shared)
            ],
            out_specs=pl.BlockSpec((1, 8, 128), lambda i, j: (i, 0, 0)),
            scratch_shapes=[pltpu.VMEM((1, n), jnp.float32)],  # small accumulator
        ),
        compiler_params=pltpu.CompilerParams(
            dimension_semantics=("parallel", "arbitrary"),
            vmem_limit_bytes=vmem_limit,
        ),
    )(mm2, mask2, label2)

    # Sum the per-core partials and apply the mean reduction.
    # (All-f32 reduction; for extreme c*q*t with many -100-clamped terms a host
    #  f64 final sum would tighten the tolerance further.)
    return jnp.sum(partials[:, 0, 0]) / jnp.float32(total)


def _reference(matching_matrix, label, mask):
    p = matching_matrix * mask.astype(jnp.float32)
    y = jnp.broadcast_to(label[None], p.shape)
    log_p = jnp.maximum(jnp.log(p), -100.0)
    log_1mp = jnp.maximum(jnp.log1p(-p), -100.0)
    return -jnp.mean(y * log_p + (1.0 - y) * log_1mp)


if __name__ == "__main__":
    base_key = jax.random.PRNGKey(0)

    def run_case(c, q, t, soft_label=False, **kw):
        key = jax.random.fold_in(base_key, c * 10000 + q * 100 + t)
        k1, k2, k3 = jax.random.split(key, 3)
        mm = jax.nn.sigmoid(jax.random.normal(k1, (c, q, t), dtype=jnp.float32))
        if soft_label:
            label = jax.random.uniform(k2, (q, t), dtype=jnp.float32)
        else:
            label = (jax.random.uniform(k2, (q, t)) > 0.5).astype(jnp.float32)
        mask = jax.random.uniform(k3, (c, q, t)) > 0.2
        loss = jax.block_until_ready(
            permutation_loss(mm, label, mask, binary_labels=not soft_label, **kw))
        ref = jax.block_until_ready(_reference(mm, label, mask))
        assert jnp.allclose(loss, ref, rtol=1e-4, atol=1e-4), (c, q, t, loss, ref)

    small_tile = 32 * 128 * 5   # forces c_tile=32 on the (., 8, 16) cases below

    # Single-block path (q*t = 128 lanes), binary-label fast path.
    run_case(4, 8, 16)
    # Non-multiple-of-128 lane width + soft labels (general factored BCE path).
    run_case(6, 8, 24, soft_label=True)
    # Even tiling: c_tile=32, 4 blocks -> grid (2, 2) dual-TC split.
    run_case(128, 8, 16, target_tile_bytes=small_tile)
    # Ragged tail c-tile (c % c_tile != 0) exercising the gated tail row mask.
    run_case(100, 8, 16, target_tile_bytes=small_tile)
    # Odd number of c-tiles (3) + ragged tail: gated duplicate step AND row mask.
    run_case(80, 8, 16, target_tile_bytes=small_tile)
    # Odd number of c-tiles, no ragged tail, soft labels (general path, tiled).
    run_case(96, 8, 16, soft_label=True, target_tile_bytes=small_tile)

    print("KERNEL_OK")
</pallas_src>

<mosaic_0001>
module attributes {stable_mosaic.version = 11 : i64} {
  func.func @_perm_loss_kernel(%arg0: i32, %arg1: i32, %arg2: memref<4x128xf32, #tpu.memory_space<vmem>>, %arg3: memref<4x128xi8, #tpu.memory_space<vmem>>, %arg4: memref<1x128xf32, #tpu.memory_space<vmem>>, %arg5: memref<1x8x128xf32, #tpu.memory_space<vmem>>, %arg6: memref<1x128xf32, #tpu.memory_space<vmem>>) attributes {dimension_semantics = [#tpu.dimension_semantics<parallel>, #tpu.dimension_semantics<arbitrary>], iteration_bounds = array<i64: 1, 1>, scalar_prefetch = 0 : i64, scratch_operands = 1 : i64, tpu.core_type = #tpu.core_type<tc>, window_params = [{transform_indices = @transform_0, window_bounds = array<i64: 4, 128>}, {transform_indices = @transform_1, window_bounds = array<i64: 4, 128>}, {pipeline_mode = #tpu.pipeline_mode<synchronous>, transform_indices = @transform_2, window_bounds = array<i64: 1, 128>}, {transform_indices = @transform_3, window_bounds = array<i64: 1, 8, 128>}]} {
    %c1_i32 = arith.constant 1 : i32
    %0 = arith.muli %arg0, %c1_i32 : i32
    %1 = arith.addi %0, %arg1 : i32
    %c0_i32 = arith.constant 0 : i32
    %2 = arith.cmpi eq, %arg1, %c0_i32 : i32
    %3 = arith.extui %2 : i1 to i32
    %c0_i32_0 = arith.constant 0 : i32
    %4 = arith.cmpi ne, %3, %c0_i32_0 : i32
    scf.if %4 {
      %cst_13 = arith.constant 0.000000e+00 : f32
      %28 = vector.broadcast %cst_13 : f32 to vector<1x128xf32>
      %c0_14 = arith.constant 0 : index
      %c0_15 = arith.constant 0 : index
      %29 = vector.load %arg6[%c0_14, %c0_15] : memref<1x128xf32, #tpu.memory_space<vmem>>, vector<1x128xf32>
      tpu.vector_store %arg6[%c0_14, %c0_15], %28 {strides = array<i32>} : memref<1x128xf32, #tpu.memory_space<vmem>>, vector<1x128xf32>,
    } else {
    }
    %c0 = arith.constant 0 : index
    %c0_1 = arith.constant 0 : index
    %5 = vector.load %arg2[%c0, %c0_1] : memref<4x128xf32, #tpu.memory_space<vmem>>, vector<4x128xf32>
    %c0_2 = arith.constant 0 : index
    %c0_3 = arith.constant 0 : index
    %6 = vector.load %arg3[%c0_2, %c0_3] : memref<4x128xi8, #tpu.memory_space<vmem>>, vector<4x128xi8>
    %c0_i8 = arith.constant 0 : i8
    %7 = vector.broadcast %c0_i8 : i8 to vector<4x128xi8>
    %8 = arith.cmpi ne, %6, %7 : vector<4x128xi8>
    %cst = arith.constant 0.000000e+00 : f32
    %9 = vector.broadcast %cst : f32 to vector<4x128xf32>
    %10 = arith.select %8, %5, %9 : vector<4x128xi1>, vector<4x128xf32>
    %c0_4 = arith.constant 0 : index
    %c0_5 = arith.constant 0 : index
    %11 = vector.load %arg4[%c0_4, %c0_5] : memref<1x128xf32, #tpu.memory_space<vmem>>, vector<1x128xf32>
    %cst_6 = arith.constant 5.000000e-01 : f32
    %12 = vector.broadcast %cst_6 : f32 to vector<1x128xf32>
    %13 = arith.cmpf ogt, %11, %12 : vector<1x128xf32>
    %cst_7 = arith.constant 1.000000e+00 : f32
    %14 = vector.broadcast %cst_7 : f32 to vector<4x128xf32>
    %15 = arith.subf %14, %10 : vector<4x128xf32>
    %16 = vector.shape_cast %13 : vector<1x128xi1> to vector<1x128xi1>
    %17 = vector.broadcast %16 : vector<1x128xi1> to vector<4x128xi1>
    %18 = arith.select %17, %10, %15 : vector<4x128xi1>, vector<4x128xf32>
    %19 = math.log %18 : vector<4x128xf32>
    %cst_8 = arith.constant -1.000000e+02 : f32
    %20 = vector.broadcast %cst_8 : f32 to vector<4x128xf32>
    %21 = arith.maximumf %19, %20 : vector<4x128xf32>
    %c1_i32_9 = arith.constant 1 : i32
    %22 = arith.cmpi slt, %1, %c1_i32_9 : i32
    %23 = arith.extui %22 : i1 to i32
    %c0_i32_10 = arith.constant 0 : i32
    %24 = arith.cmpi ne, %23, %c0_i32_10 : i32
    scf.if %24 {
      %c0_13 = arith.constant 0 : index
      %c0_14 = arith.constant 0 : index
      %28 = vector.load %arg6[%c0_13, %c0_14] : memref<1x128xf32, #tpu.memory_space<vmem>>, vector<1x128xf32>
      %cst_15 = arith.constant dense<0.000000e+00> : vector<128xf32>
      %29 = vector.multi_reduction <add>, %21, %cst_15 [0] : vector<4x128xf32> to vector<128xf32>
      %30 = vector.shape_cast %29 : vector<128xf32> to vector<1x128xf32>
      %31 = arith.addf %28, %30 : vector<1x128xf32>
      %c0_16 = arith.constant 0 : index
      %c0_17 = arith.constant 0 : index
      %32 = vector.load %arg6[%c0_16, %c0_17] : memref<1x128xf32, #tpu.memory_space<vmem>>, vector<1x128xf32>
      tpu.vector_store %arg6[%c0_16, %c0_17], %31 {strides = array<i32>} : memref<1x128xf32, #tpu.memory_space<vmem>>, vector<1x128xf32>,
    } else {
    }
    %c0_i32_11 = arith.constant 0 : i32
    %25 = arith.cmpi eq, %arg1, %c0_i32_11 : i32
    %26 = arith.extui %25 : i1 to i32
    %c0_i32_12 = arith.constant 0 : i32
    %27 = arith.cmpi ne, %26, %c0_i32_12 : i32
    scf.if %27 {
      %c0_13 = arith.constant 0 : index
      %c0_14 = arith.constant 0 : index
      %28 = vector.load %arg6[%c0_13, %c0_14] : memref<1x128xf32, #tpu.memory_space<vmem>>, vector<1x128xf32>
      %29 = vector.shape_cast %28 : vector<1x128xf32> to vector<1x1x128xf32>
      %cst_15 = arith.constant dense<0.000000e+00> : vector<1xf32>
      %30 = vector.multi_reduction <add>, %29, %cst_15 [1, 2] : vector<1x1x128xf32> to vector<1xf32>
      %31 = vector.shape_cast %30 : vector<1xf32> to vector<1x1x1xf32>
      %32 = vector.extract %31[0, 0, 0] : f32 from vector<1x1x1xf32>
      %cst_16 = arith.constant 0.000000e+00 : f32
      %33 = arith.subf %cst_16, %32 : f32
      %34 = vector.broadcast %33 : f32 to vector<1x8x128xf32>
      %c0_17 = arith.constant 0 : index
      %c0_18 = arith.constant 0 : index
      %c0_19 = arith.constant 0 : index
      %35 = vector.load %arg5[%c0_17, %c0_18, %c0_19] : memref<1x8x128xf32, #tpu.memory_space<vmem>>, vector<1x8x128xf32>
      tpu.vector_store %arg5[%c0_17, %c0_18, %c0_19], %34 {strides = array<i32>} : memref<1x8x128xf32, #tpu.memory_space<vmem>>, vector<1x8x128xf32>,
    } else {
    }
    return
  }
  func.func @transform_0(%arg0: i32, %arg1: i32) -> (i32, i32) {
    %c1_i32 = arith.constant 1 : i32
    %0 = arith.muli %arg0, %c1_i32 : i32
    %1 = arith.addi %0, %arg1 : i32
    %c0_i32 = arith.constant 0 : i32
    %2 = arith.minsi %1, %c0_i32 : i32
    %c0_i32_0 = arith.constant 0 : i32
    %c0_i32_1 = arith.constant 0 : i32
    return %2, %c0_i32_0 : i32, i32
  }
  func.func @transform_1(%arg0: i32, %arg1: i32) -> (i32, i32) {
    %c1_i32 = arith.constant 1 : i32
    %0 = arith.muli %arg0, %c1_i32 : i32
    %1 = arith.addi %0, %arg1 : i32
    %c0_i32 = arith.constant 0 : i32
    %2 = arith.minsi %1, %c0_i32 : i32
    %c0_i32_0 = arith.constant 0 : i32
    %c0_i32_1 = arith.constant 0 : i32
    return %2, %c0_i32_0 : i32, i32
  }
  func.func @transform_2(%arg0: i32, %arg1: i32) -> (i32, i32) {
    %c0_i32 = arith.constant 0 : i32
    %c0_i32_0 = arith.constant 0 : i32
    %c0_i32_1 = arith.constant 0 : i32
    return %c0_i32, %c0_i32_0 : i32, i32
  }
  func.func @transform_3(%arg0: i32, %arg1: i32) -> (i32, i32, i32) {
    %c0_i32 = arith.constant 0 : i32
    %c0_i32_0 = arith.constant 0 : i32
    %c0_i32_1 = arith.constant 0 : i32
    return %arg0, %c0_i32, %c0_i32_0 : i32, i32, i32
  }
}

</mosaic_0001>

<bundles_post_ra>
// kernel: tpu_custom_call.1
= control target key start
LH: loop header
LB: loop body
LE: loop exit
PB: predicated region body
PF: predicated region fallthrough
CT: control target
= control target key end

     0   :  { %8 = vsyncpa [#allocation4], 0  ;;  %s250_s0 = inlined_call_operand.hbm [shape: f32[4,128], index: 0, kind: input, shape index: {}]   ;;  %s251_s1 = inlined_call_operand.vmem [shape: s8[4,128], index: 1, kind: input, shape index: {}]   ;;  %s252_s2 = inlined_call_operand.vmem [shape: f32[1,128], index: 2, kind: input, shape index: {}]   ;;  %s253_s3 = inlined_call_operand.hbm [shape: f32[1,8,128], index: 3, kind: output, shape index: {}]  }
   0x1   :  { %9 = vsyncpa [#allocation5], 0  ;;  %s196_s12 = smov [#allocation3]   ;;  %s148_s16 = scalar_lea.hbm %s250_s0, 64 }
   0x2   :  { %s21_s13 = sshll.u32 %s196_s12, 4  ;;  %p149_p0 = scmp.ne.s32.totalorder %s250_s0, %s148_s16  ;;  %s22_s13 = int_to_ptr.vmem [resolvable:$true] %s21_s13 }
   0x3   :  { %p152_p1 = scmp.lt.u32.totalorder %s148_s16, %s250_s0 }
   0x5   :  { %p154_p2 = pnand %p152_p1, %p149_p0 }
   0x7   :  { %157 = shalt.err (!%p154_p2)
}
   0x8   :  { %s158_s21 = scalar_lea.vmem %s22_s13, 64  ;;  %p163_p4 = scmp.lt.s32.totalorder %s22_s13, %s22_s13 }
   0x9   :  { %p159_p3 = scmp.ne.s32.totalorder %s22_s13, %s158_s21  ;;  %p164_p5 = scmp.lt.s32.totalorder %s158_s21, %s158_s21 }
   0xb   :  { %p165_p6 = por %p164_p5, %p163_p4 }
   0xd   :  { %p166_p7 = pnand %p165_p6, %p159_p3 }
   0xf   :  { %169 = shalt.err (!%p166_p7)
}
  0x10   :  { %24 = dma.hbm_to_vmem [thread:$0]  %s250_s0, 64, %s22_s13, [#allocation4]  }
  0x11   :  { %192 = dma.done.wait [#allocation4], 64  }
  0x12   :  { %193 = vsyncadd [#allocation4], 4294967232  ;;  %v78_v0 = vlaneseq  ;;  %v197_v1 = vmov 0.0   ;;  %v68_v4 = vld [vmem:[%s251_s1] sm:$0x1]  ;;  %v198_v6 = vmov 0  }
  0x13   :  { %66 = vst [vmem:[#allocation2] sm:$0x1] %v197_v1  ;;  %v74_v5 = vld [vmem:[%s252_s2] sm:$0x1]  ;;  %vm69_vm0 = vnez %v68_v4  ;;  %v67_v9 = vld [vmem:[#allocation3] sm:$0xf] }
  0x14   :  { %v79_v2 = vshrl.u32 %v78_v0, 7  ;;  %vm75_vm1 = vcmp.gt.f32.partialorder %v74_v5, 0.5  ;;  %v70_v7 = vsel %vm69_vm0, 16843009, %v198_v6  ;;  %vm92_vm4 = vcmask 1043456   ;;  %s199_s0 = smov [#allocation6]  }
  0x15   :  { %v77_v8 = vsel %vm75_vm1, 1, %v198_v6  ;;  %v71_v10 = vunpack.c.0.s8 %v70_v7  ;;  %vm106_vm5 = vcmask 1040384   ;;  %s126_s1 = sshll.u32 %s199_s0, 4  ;;  %s127_s1 = int_to_ptr.vmem [resolvable:$true] %s126_s1 }
  0x16   :  { %v80_v3 = vsub.s32 0, %v79_v2  ;;  %s170_s29 = scalar_lea.vmem %s127_s1, 128  ;;  %p175_p9 = scmp.lt.s32.totalorder %s127_s1, %s127_s1 }
  0x17   :  { %vm72_vm2 = vcmp.ne.s32.totalorder %v71_v10, 0  ;;  %p171_p8 = scmp.ne.s32.totalorder %s127_s1, %s170_s29  ;;  %p176_p10 = scmp.lt.s32.totalorder %s170_s29, %s170_s29 }
  0x18   :  { %v81_v11 = vrot.slane %v77_v8, %v80_v3  ;;  %v73_v12 = vsel %vm72_vm2, %v67_v9, 0.0 }
  0x19   :  { %v76_v13 = vsub.f32 1.0, %v73_v12  ;;  %p177_p11 = por %p176_p10, %p175_p9 }
  0x1a   :  { %vm82_vm3 = vcmp.eq.s32.totalorder %v81_v11, 1  ;;  %v91_v24 = vld [vmem:[#allocation2] sm:$0x1] }
  0x1b   :  { %v83_v14 = vsel %vm82_vm3, %v73_v12, %v76_v13  ;;  %p178_p12 = pnand %p177_p11, %p171_p8 }
  0x1c   :  { %146 = vlog2.f32 %v83_v14 }
  0x26   :  { %v147_v15 = vpop.eup %146 }
  0x27   :  { %v85_v16 = vmul.f32 0.6931472, %v147_v15 }
  0x29   :  { %v86_v17 = vmax.f32 %v85_v16, -100.0 }
  0x2b   :  { %v93_v18 = vsel %vm92_vm4, %v86_v17, 0.0 }
  0x2c   :  { %v94_v19 = vrot.slane %v93_v18, 4 }
  0x2e   :  { %v95_v20 = vadd.f32 %v94_v19, %v93_v18 }
  0x30   :  { %v96_v21 = vrot.slane %v95_v20, 2 }
  0x32   :  { %v97_v22 = vadd.f32 %v96_v21, %v95_v20 }
  0x34   :  { %v98_v23 = vrot.slane %v97_v22, 1 }
  0x36   :  { %v99_v25 = vadd.f32 %v98_v23, %v97_v22 }
  0x38   :  { %v100_v26 = vadd.f32 %v99_v25, %v91_v24 }
  0x3a   :  { %101 = vst [vmem:[#allocation2] sm:$0x1] %v100_v26 }
  0x41   :  { %v105_v27 = vld [vmem:[#allocation2] sm:$0x1] }
  0x42   :  { %v107_v28 = vsel %vm106_vm5, %v105_v27, 0.0 }
  0x43   :  { %108 = vadd.xlane.f32.xlu0 %v107_v28 }
  0xd0   :  { %v109_v29 = vpop.xlane.xlu0 %108 }
  0xd1   :  { %v110_v30 = vrot.slane %v109_v29, 4 }
  0xd3   :  { %v111_v31 = vadd.f32 %v110_v30, %v109_v29 }
  0xd5   :  { %v112_v32 = vrot.slane %v111_v31, 2 }
  0xd7   :  { %v113_v33 = vadd.f32 %v112_v32, %v111_v31 }
  0xd9   :  { %v114_v34 = vrot.slane %v113_v33, 1 }
  0xdb   :  { %v115_v35 = vadd.f32 %v114_v34, %v113_v33 }
  0xdd   :  { %140 = vpush %v115_v35 }
 0x10e   :  { %s141_s2 = spop %140 }
 0x10f   :  { %s117_s28 = ssub.f32 0.0, %s141_s2 }
 0x111   :  { %v118_v36 = vstv %s117_s28 }
 0x112   :  { %119 = vst [vmem:[#allocation6] sm:$0xff] %v118_v36 }
 0x113   :  { %181 = shalt.err (!%p178_p12)
}
 0x114   :  { %s182_s5 = scalar_lea.hbm %s253_s3, 128 }
 0x115   :  { %p183_p13 = scmp.ne.s32.totalorder %s253_s3, %s182_s5  ;;  %p186_p0 = scmp.lt.u32.totalorder %s182_s5, %s253_s3 }
 0x117   :  { %p188_p1 = pnand %p186_p0, %p183_p13 }
 0x119   :  { %191 = shalt.err (!%p188_p1)
}
 0x11a   :  { %129 = dma.vmem_to_hbm [thread:$0]  %s127_s1, 128, %s253_s3, [#allocation5]  }
 0x11b   :  { %194 = dma.done.wait [#allocation5], 128  }
 0x11c   :  { %195 = vsyncadd [#allocation5], 4294967168 }
 0x11d   :  { %133 = vsyncpa [#allocation4], 1 }
 0x11e   :  { %134 = vsyncpa [#allocation5], 1 }

</bundles_post_ra>
